<compile_context>
chip_gen: v5e
topology: v5e:2x2
jax: 0.10.0
libtpu: 0.0.40
codegen_flags: <defaults>
</compile_context>

<pallas_src>
import math

import jax
import jax.numpy as jnp
from jax.experimental import pallas as pl
from jax.experimental.pallas import tpu as pltpu


def _round_up(v: int, m: int) -> int:
    return -(-v // m) * m


def _round_down(v: int, m: int) -> int:
    return (v // m) * m


def build_positional_encoding(d_model: int, max_len: int = 5000) -> jnp.ndarray:
    """Sinusoidal table identical to the PyTorch __init__.  Build once, keep f32."""
    position = jnp.arange(max_len, dtype=jnp.float32)[:, None]                # (max_len, 1)
    div_term = jnp.exp(
        jnp.arange(0, d_model, 2, dtype=jnp.float32)
        * -(math.log(10000.0) / d_model)
    )                                                                          # (d_model/2,)
    angles = position * div_term                                               # (max_len, d_model/2)
    pe = jnp.zeros((max_len, d_model), dtype=jnp.float32)
    pe = pe.at[:, 0::2].set(jnp.sin(angles))
    pe = pe.at[:, 1::2].set(jnp.cos(angles))
    return pe[None, :, :]                                                      # (1, max_len, d_model) f32


def _add_pe_kernel(x_ref, pe_ref, o_ref):
    # Add in f32 (PE stays f32), cast the sum to the activation dtype on store.
    # pe_ref has a leading dim of 1 and broadcasts over the batch dim of x_ref.
    o_ref[...] = (
        x_ref[...].astype(jnp.float32) + pe_ref[...].astype(jnp.float32)
    ).astype(o_ref.dtype)


_VMEM_LIMIT = 32 * 1024 * 1024  # safe on v5e/v6e (128 MiB phys) and v7x (64 MiB phys)


def positional_encoding_forward(
    x: jnp.ndarray, pe: jnp.ndarray, *, target_tile_bytes: int = 2 << 20
) -> jnp.ndarray:
    """x: (B, S, D); pe: (1, max_len, D) float32 table. Returns x + pe[:, :S, :] in x.dtype."""
    B, S, D = x.shape
    assert pe.ndim == 3 and pe.shape[0] == 1 and pe.shape[2] == D and pe.shape[1] >= S
    x_isz = jnp.dtype(x.dtype).itemsize
    pe_isz = jnp.dtype(pe.dtype).itemsize

    if D % 128 == 0:
        # ---------- lane-dense path: tile the sequence dimension ----------
        # Preferred: fold the whole batch into the block -> grid = seq tiles only.
        bytes_per_row_folded = max(B * x_isz, pe_isz) * D          # worst stream per seq row
        ts = _round_down(target_tile_bytes // bytes_per_row_folded, 8)
        if ts >= 8:
            ts = min(ts, S)
            if pl.cdiv(S, ts) == 1 and S >= 16:
                # Keep >= 2 parallel grid steps so both v7x TensorCores get work.
                ts = _round_up(pl.cdiv(S, 2), 8)
            grid = (pl.cdiv(S, ts),)
            return pl.pallas_call(
                _add_pe_kernel,
                out_shape=jax.ShapeDtypeStruct((B, S, D), x.dtype),
                grid_spec=pltpu.PrefetchScalarGridSpec(
                    num_scalar_prefetch=0,
                    grid=grid,
                    in_specs=[
                        pl.BlockSpec((B, ts, D), lambda s: (0, s, 0)),   # x: full batch per tile
                        pl.BlockSpec((1, ts, D), lambda s: (0, s, 0)),   # PE: windowed table
                    ],
                    out_specs=pl.BlockSpec((B, ts, D), lambda s: (0, s, 0)),
                ),
                compiler_params=pltpu.CompilerParams(
                    dimension_semantics=("parallel",),
                    vmem_limit_bytes=_VMEM_LIMIT,
                ),
            )(x, pe)

        # Fallback (B*D too large to fold): per-batch tiles, batch INNERMOST so the
        # PE block index is invariant across consecutive steps (PE DMA reused).
        bytes_per_row = max(x_isz, pe_isz) * D
        ts = max(8, _round_down(target_tile_bytes // bytes_per_row, 8))
        ts = min(ts, S)
        grid = (pl.cdiv(S, ts), B)
        return pl.pallas_call(
            _add_pe_kernel,
            out_shape=jax.ShapeDtypeStruct((B, S, D), x.dtype),
            grid_spec=pltpu.PrefetchScalarGridSpec(
                num_scalar_prefetch=0,
                grid=grid,
                in_specs=[
                    pl.BlockSpec((1, ts, D), lambda s, b: (b, s, 0)),
                    pl.BlockSpec((1, ts, D), lambda s, b: (0, s, 0)),
                ],
                out_specs=pl.BlockSpec((1, ts, D), lambda s, b: (b, s, 0)),
            ),
            compiler_params=pltpu.CompilerParams(
                dimension_semantics=("parallel", "parallel"),
                vmem_limit_bytes=_VMEM_LIMIT,
            ),
        )(x, pe)

    # ---------- D not lane-aligned: flatten to (B, S*D) for unmasked wide stores ----------
    n = S * D
    x_flat = x.reshape(B, n)
    # Free contiguous reshape of the WHOLE table (no per-call slice copy); the BlockSpec
    # windows the first n columns.  Columns >= n only feed masked output stores.
    pe_flat = pe.reshape(1, pe.shape[1] * D)
    # VMEM accounting with sublane padding: (B, tile) blocks with few rows pad to
    # 8 (f32) / 16 (bf16) sublanes; the (1, tile) f32 PE block pads to 8 sublanes.
    pack = max(1, 4 // x_isz)
    rows_pad_x = _round_up(max(B, 1), 8 * pack)
    bytes_per_col = max(rows_pad_x * x_isz, 8 * pe_isz)
    tile = max(128, _round_down(target_tile_bytes // bytes_per_col, 128))
    tile = min(tile, _round_up(n, 128))
    grid = (pl.cdiv(n, tile),)
    out = pl.pallas_call(
        _add_pe_kernel,
        out_shape=jax.ShapeDtypeStruct((B, n), x.dtype),
        grid_spec=pltpu.PrefetchScalarGridSpec(
            num_scalar_prefetch=0,
            grid=grid,
            in_specs=[
                pl.BlockSpec((B, tile), lambda t: (0, t)),    # x tile (full batch)
                pl.BlockSpec((1, tile), lambda t: (0, t)),    # PE window of full table
            ],
            out_specs=pl.BlockSpec((B, tile), lambda t: (0, t)),
        ),
        compiler_params=pltpu.CompilerParams(
            dimension_semantics=("parallel",),
            vmem_limit_bytes=_VMEM_LIMIT,
        ),
    )(x_flat, pe_flat)
    return out.reshape(B, S, D)


if __name__ == "__main__":
    key = jax.random.PRNGKey(0)
    MAX_LEN = 64

    # --- demo shape implied by the module: (batch=2, seq=8, d_model=32) -> flat path ---
    B, S, D = 2, 8, 32
    x = jax.random.normal(key, (B, S, D), dtype=jnp.float32)
    pe32 = build_positional_encoding(D, max_len=MAX_LEN)   # built once (register_buffer analogue)

    out = jax.block_until_ready(positional_encoding_forward(x, pe32))
    ref = x + pe32[:, :S, :]
    assert out.shape == (B, S, D) and out.dtype == x.dtype
    assert jnp.allclose(out, ref, atol=1e-6), "f32 flat-path mismatch vs reference"

    # --- bf16 activations (PE kept f32, added in f32 in-kernel, cast on store) ---
    x_bf = x.astype(jnp.bfloat16)
    out_bf = jax.block_until_ready(positional_encoding_forward(x_bf, pe32))
    ref_bf = (x_bf.astype(jnp.float32) + pe32[:, :S, :]).astype(jnp.bfloat16)
    assert out_bf.dtype == jnp.bfloat16
    assert jnp.allclose(
        out_bf.astype(jnp.float32), ref_bf.astype(jnp.float32), atol=2e-2
    ), "bf16 flat-path mismatch vs reference"

    # --- flat path with a non-multiple-of-128 logical extent (S*D = 320) ---
    S3 = 10
    x3 = jax.random.normal(jax.random.PRNGKey(1), (B, S3, D), dtype=jnp.float32)
    out3 = jax.block_until_ready(positional_encoding_forward(x3, pe32))
    assert jnp.allclose(out3, x3 + pe32[:, :S3, :], atol=1e-6), "partial-tile flat-path mismatch"

    # --- lane-aligned D (D % 128 == 0) -> batch-folded tiled 3-D path, 2 grid steps ---
    B2, S2, D2 = 2, 20, 128
    x2 = jax.random.normal(jax.random.PRNGKey(2), (B2, S2, D2), dtype=jnp.float32)
    pe2 = build_positional_encoding(D2, max_len=MAX_LEN)
    out2 = jax.block_until_ready(positional_encoding_forward(x2, pe2))
    assert jnp.allclose(out2, x2 + pe2[:, :S2, :], atol=1e-6), "3-D folded-path mismatch"

    print("KERNEL_OK")
</pallas_src>

<mosaic_0001>
module attributes {stable_mosaic.version = 11 : i64} {
  func.func @_add_pe_kernel(%arg0: i32, %arg1: memref<2x256xf32, #tpu.memory_space<vmem>>, %arg2: memref<1x256xf32, #tpu.memory_space<vmem>>, %arg3: memref<2x256xf32, #tpu.memory_space<vmem>>) attributes {dimension_semantics = [#tpu.dimension_semantics<parallel>], iteration_bounds = array<i64: 1>, scalar_prefetch = 0 : i64, scratch_operands = 0 : i64, tpu.core_type = #tpu.core_type<tc>, window_params = [{transform_indices = @transform_0, window_bounds = array<i64: 2, 256>}, {transform_indices = @transform_1, window_bounds = array<i64: 1, 256>}, {transform_indices = @transform_2, window_bounds = array<i64: 2, 256>}]} {
    %c0 = arith.constant 0 : index
    %c0_0 = arith.constant 0 : index
    %0 = vector.load %arg1[%c0, %c0_0] : memref<2x256xf32, #tpu.memory_space<vmem>>, vector<2x256xf32>
    %c0_1 = arith.constant 0 : index
    %c0_2 = arith.constant 0 : index
    %1 = vector.load %arg2[%c0_1, %c0_2] : memref<1x256xf32, #tpu.memory_space<vmem>>, vector<1x256xf32>
    %2 = vector.broadcast %1 : vector<1x256xf32> to vector<2x256xf32>
    %3 = arith.addf %0, %2 : vector<2x256xf32>
    %c0_3 = arith.constant 0 : index
    %c0_4 = arith.constant 0 : index
    %4 = vector.load %arg3[%c0_3, %c0_4] : memref<2x256xf32, #tpu.memory_space<vmem>>, vector<2x256xf32>
    tpu.vector_store %arg3[%c0_3, %c0_4], %3 {strides = array<i32>} : memref<2x256xf32, #tpu.memory_space<vmem>>, vector<2x256xf32>,
    return
  }
  func.func @transform_0(%arg0: i32) -> (i32, i32) {
    %c0_i32 = arith.constant 0 : i32
    %c0_i32_0 = arith.constant 0 : i32
    return %c0_i32, %arg0 : i32, i32
  }
  func.func @transform_1(%arg0: i32) -> (i32, i32) {
    %c0_i32 = arith.constant 0 : i32
    %c0_i32_0 = arith.constant 0 : i32
    return %c0_i32, %arg0 : i32, i32
  }
  func.func @transform_2(%arg0: i32) -> (i32, i32) {
    %c0_i32 = arith.constant 0 : i32
    %c0_i32_0 = arith.constant 0 : i32
    return %c0_i32, %arg0 : i32, i32
  }
}

</mosaic_0001>

<bundles_post_ra>
// kernel: tpu_custom_call.1
= control target key start
LH: loop header
LB: loop body
LE: loop exit
PB: predicated region body
PF: predicated region fallthrough
CT: control target
= control target key end

     0   :  { %7 = vsyncpa [#allocation3], 0  ;;  %s177_s0 = inlined_call_operand.hbm [shape: f32[2,256], index: 0, kind: input, shape index: {}]   ;;  %s178_s1 = inlined_call_operand.hbm [shape: f32[1,2048], index: 1, kind: input, shape index: {}]   ;;  %s179_s2 = inlined_call_operand.hbm [shape: f32[2,256], index: 2, kind: output, shape index: {}]  }
   0x1   :  { %8 = vsyncpa [#allocation6], 0 }
   0x2   :  { %9 = vsyncpa [#allocation4], 0  ;;  %s15_s11 = sshll.u32 %s177_s0, 4  ;;  %s150_s12 = smov [#allocation2]   ;;  %s16_s11 = int_to_ptr.hbm [resolvable:$true] %s15_s11 }
   0x3   :  { %s17_s13 = sshll.u32 %s150_s12, 4  ;;  %s26_s16 = sshll.u32 %s178_s1, 4  ;;  %s18_s13 = int_to_ptr.vmem [resolvable:$true] %s17_s13  ;;  %s27_s16 = int_to_ptr.hbm [resolvable:$true] %s26_s16 }
   0x4   :  { %20 = dma.hbm_to_vmem [thread:$0]  %s16_s11, 64, %s18_s13, [#allocation3]  }
   0x5   :  { %s151_s17 = smov [#allocation5]  }
   0x6   :  { %s28_s18 = sshll.u32 %s151_s17, 4  ;;  %s29_s18 = int_to_ptr.vmem [resolvable:$true] %s28_s18 }
   0x7   :  { %31 = dma.hbm_to_vmem [thread:$0]  %s27_s16, 32, %s29_s18, [#allocation6]  }
   0x8   :  { %144 = dma.done.wait [#allocation3], 64  }
   0x9   :  { %145 = vsyncadd [#allocation3], 4294967232 }
   0xa   :  { %146 = dma.done.wait [#allocation6], 32  }
   0xb   :  { %147 = vsyncadd [#allocation6], 4294967264  ;;  %v41_v0 = vld [vmem:[#allocation5] sm:$0x3]  ;;  %vm46_vm0 = vcmask 1041408   ;;  %s152_s0 = smov [#allocation7]  }
   0xc   :  { %v43_v1 = vperm.slane %v41_v0, 0  ;;  %v44_v2 = vperm.slane %v41_v0, 1  ;;  %v40_v3 = vld [vmem:[#allocation2] sm:$0xf]  ;;  %s56_s19 = sshll.u32 %s152_s0, 4  ;;  %s58_s21 = sshll.u32 %s179_s2, 4  ;;  %s57_s19 = int_to_ptr.vmem [resolvable:$true] %s56_s19  ;;  %s59_s21 = int_to_ptr.hbm [resolvable:$true] %s58_s21 }
   0xe   :  { %v45_v4 = vrot.slane %v44_v2, 6 }
  0x10   :  { %v47_v5 = vsel %vm46_vm0, %v43_v1, %v45_v4 }
  0x11   :  { %v49_v6 = vadd.f32 %v47_v5, %v40_v3 }
  0x13   :  { %50 = vst [vmem:[#allocation7] sm:$0xf] %v49_v6 }
  0x14   :  { %61 = dma.vmem_to_hbm [thread:$0]  %s57_s19, 64, %s59_s21, [#allocation4]  }
  0x15   :  { %148 = dma.done.wait [#allocation4], 64  }
  0x16   :  { %149 = vsyncadd [#allocation4], 4294967232 }
  0x17   :  { %66 = vsyncpa [#allocation3], 1 }
  0x18   :  { %67 = vsyncpa [#allocation6], 1 }
  0x19   :  { %68 = vsyncpa [#allocation4], 1 }

</bundles_post_ra>
